<compile_context>
chip_gen: v7x
topology: tpu7x:2x2x1
jax: 0.10.0
libtpu: 0.0.40
codegen_flags: <defaults>
</compile_context>

<pallas_src>
import math

import jax
import jax.numpy as jnp
from jax.experimental import pallas as pl
from jax.experimental.pallas import tpu as pltpu

HIDDEN = 32
NHEADS = 4
HEAD_DIM = HIDDEN // NHEADS
SEQ = 8
BATCH = 2
LN_EPS = 1e-5

# Param-slab layout (rows, 128 lanes), all f32:
#   rows 0:32   -> [ Wq*scale | Wk | Wv | Wo ]          (each (32,32))
#   rows 32:64  -> [ W1 | W2 | 0 | 0 ]
#   row  64     -> [ bq*scale | bk | bv | bo ]
#   row  65     -> [ b1 | b2 | g0 | be0 ]
#   row  66     -> [ g1 | be1 | 0 | 0 ]
#   rows 67:72  -> zero pad (8-row alignment)
SLAB_ROWS = 72


def encoder_layer_kernel(x_ref, p_ref, o_ref):
    T, E = x_ref.shape                       # T = SEQ*BATCH tokens, row = l*BATCH + n
    H = NHEADS
    Dh = E // H

    x = x_ref[...]                           # (T, E) f32
    P = p_ref[...]                           # (72, 128) packed params

    # static lane/sublane slices of the single param slab
    wqkv = P[0:E, 0:3 * E]                   # (E, 3E), Wq pre-scaled by 1/sqrt(Dh)
    wo = P[0:E, 3 * E:4 * E]                 # (E, E)
    w1 = P[E:2 * E, 0:E]
    w2 = P[E:2 * E, E:2 * E]
    bqkv = P[2 * E:2 * E + 1, 0:3 * E]       # (1, 3E), bq pre-scaled
    bo = P[2 * E:2 * E + 1, 3 * E:4 * E]
    b1 = P[2 * E + 1:2 * E + 2, 0:E]
    b2 = P[2 * E + 1:2 * E + 2, E:2 * E]
    g0 = P[2 * E + 1:2 * E + 2, 2 * E:3 * E]
    be0 = P[2 * E + 1:2 * E + 2, 3 * E:4 * E]
    g1 = P[2 * E + 2:2 * E + 3, 0:E]
    be1 = P[2 * E + 2:2 * E + 3, E:2 * E]

    def layer_norm(h, g, b):
        mu = jnp.mean(h, axis=-1, keepdims=True)
        c = h - mu
        var = jnp.mean(c * c, axis=-1, keepdims=True)
        return c * jax.lax.rsqrt(var + LN_EPS) * g + b

    # ---------------- pre-norm multi-head self-attention ----------------
    h0 = layer_norm(x, g0, be0)                                           # (T, E)
    qkv = jnp.dot(h0, wqkv, preferred_element_type=jnp.float32) + bqkv    # (T, 3E)
    q = qkv[:, 0:E]                          # already scaled via packed Wq/bq
    k = qkv[:, E:2 * E]
    v = qkv[:, 2 * E:3 * E]

    # Both batch elements share one (T, T) score matmul per head; cross-batch
    # pairs are masked.  Token row = l*BATCH + n  =>  batch id = row % BATCH.
    row_b = jax.lax.broadcasted_iota(jnp.int32, (T, T), 0) % BATCH
    col_b = jax.lax.broadcasted_iota(jnp.int32, (T, T), 1) % BATCH
    same_batch = row_b == col_b                                           # hoisted

    dn = (((1,), (1,)), ((), ()))            # q @ k^T: contract last dims

    ctxs = []
    for h in range(H):                       # static, fully unrolled (4 heads)
        lo = h * Dh
        qh = q[:, lo:lo + Dh]                # (T, Dh) lane slices
        kh = k[:, lo:lo + Dh]
        vh = v[:, lo:lo + Dh]
        s = jax.lax.dot_general(qh, kh, dn, preferred_element_type=jnp.float32)  # (T, T)
        s = jnp.where(same_batch, s, -1e30)
        s = s - jnp.max(s, axis=-1, keepdims=True)
        p = jnp.exp(s)
        p = p / jnp.sum(p, axis=-1, keepdims=True)     # exact divide (correctness)
        ctxs.append(jnp.dot(p, vh, preferred_element_type=jnp.float32))   # (T, Dh)

    ctx = jnp.concatenate(ctxs, axis=-1)                                  # (T, E)
    attn = jnp.dot(ctx, wo, preferred_element_type=jnp.float32) + bo      # one Wo matmul
    x1 = x + attn                            # dropout = identity (eval mode)

    # ---------------- pre-norm feed-forward ----------------
    h1 = layer_norm(x1, g1, be1)
    f = jnp.dot(h1, w1, preferred_element_type=jnp.float32) + b1
    f = jnp.maximum(f, 0.0)                  # ReLU
    f = jnp.dot(f, w2, preferred_element_type=jnp.float32) + b2
    y = x1 + f                               # (T, E)

    o_ref[...] = y.astype(o_ref.dtype)       # direct store, no in-kernel relayout


def pack_params(p):
    """Fuse 17 per-tensor parameters into ONE lane-dense (72, 128) f32 slab."""
    E = HIDDEN
    scale = 1.0 / math.sqrt(HEAD_DIM)
    wq = p["wq"] * scale                     # fold 1/sqrt(Dh) into Q weight/bias
    bq = p["bq"] * scale
    row_w0 = jnp.concatenate([wq, p["wk"], p["wv"], p["wo"]], axis=1)            # (32,128)
    row_w1 = jnp.concatenate([p["w1"], p["w2"],
                              jnp.zeros((E, 2 * E), jnp.float32)], axis=1)       # (32,128)
    vec0 = jnp.concatenate([bq, p["bk"], p["bv"], p["bo"]], axis=1)              # (1,128)
    vec1 = jnp.concatenate([p["b1"], p["b2"], p["g0"], p["be0"]], axis=1)        # (1,128)
    vec2 = jnp.concatenate([p["g1"], p["be1"],
                            jnp.zeros((1, 2 * E), jnp.float32)], axis=1)         # (1,128)
    pad = jnp.zeros((SLAB_ROWS - (2 * E + 3), 4 * E), jnp.float32)               # (5,128)
    return jnp.concatenate([row_w0, row_w1, vec0, vec1, vec2, pad], axis=0)      # (72,128)


@jax.jit
def transformer_encoder_layer(x, param_slab):
    """x: (L, N, E) float32 (seq, batch, embed). Returns (L, N, E)."""
    L, N, E = x.shape
    x_tok = x.reshape(L * N, E)              # free contiguous reshape (no transpose)

    def full(shape):
        return pl.BlockSpec(shape, lambda i, _ndim=len(shape): (0,) * _ndim)

    out = pl.pallas_call(
        encoder_layer_kernel,
        out_shape=jax.ShapeDtypeStruct((L * N, E), x.dtype),
        grid=(1,),
        in_specs=[
            full((L * N, E)),                # token slab
            full((SLAB_ROWS, 4 * E)),        # single packed param slab (72, 128)
        ],
        out_specs=full((L * N, E)),
        compiler_params=pltpu.CompilerParams(dimension_semantics=("arbitrary",)),
    )(x_tok, param_slab)

    return out.reshape(L, N, E)              # free contiguous reshape back


def reference(x, p):
    """Pure-JAX reference matching the PyTorch forward (eval mode)."""
    def ln(h, g, b):
        mu = h.mean(-1, keepdims=True)
        var = ((h - mu) ** 2).mean(-1, keepdims=True)
        return (h - mu) / jnp.sqrt(var + LN_EPS) * g + b

    L, N, E = x.shape
    h = ln(x, p["g0"], p["be0"])
    q = h @ p["wq"] + p["bq"]
    k = h @ p["wk"] + p["bk"]
    v = h @ p["wv"] + p["bv"]
    qh = q.reshape(L, N, NHEADS, HEAD_DIM).transpose(1, 2, 0, 3)
    kh = k.reshape(L, N, NHEADS, HEAD_DIM).transpose(1, 2, 0, 3)
    vh = v.reshape(L, N, NHEADS, HEAD_DIM).transpose(1, 2, 0, 3)
    s = (qh / math.sqrt(HEAD_DIM)) @ kh.transpose(0, 1, 3, 2)
    pa = jax.nn.softmax(s, axis=-1)
    o = (pa @ vh).transpose(2, 0, 1, 3).reshape(L, N, E)
    o = o @ p["wo"] + p["bo"]
    x1 = x + o
    h2 = ln(x1, p["g1"], p["be1"])
    f = jax.nn.relu(h2 @ p["w1"] + p["b1"])
    f = f @ p["w2"] + p["b2"]
    return x1 + f


def make_params(key, E):
    ks = jax.random.split(key, 8)
    s = 1.0 / math.sqrt(E)
    return {
        # projection weights stored as (in, out) = W^T so kernel does x @ W
        "wq": jax.random.normal(ks[0], (E, E), jnp.float32) * s,
        "wk": jax.random.normal(ks[1], (E, E), jnp.float32) * s,
        "wv": jax.random.normal(ks[2], (E, E), jnp.float32) * s,
        "wo": jax.random.normal(ks[3], (E, E), jnp.float32) * s,
        "w1": jax.random.normal(ks[4], (E, E), jnp.float32) * s,
        "w2": jax.random.normal(ks[5], (E, E), jnp.float32) * s,
        "bq": jax.random.normal(ks[6], (1, E), jnp.float32) * 0.02,
        "bk": jnp.zeros((1, E), jnp.float32),
        "bv": jax.random.normal(ks[7], (1, E), jnp.float32) * 0.02,
        "bo": jnp.zeros((1, E), jnp.float32),
        "b1": jnp.full((1, E), 0.01, jnp.float32),
        "b2": jnp.full((1, E), -0.01, jnp.float32),
        "g0": jnp.ones((1, E), jnp.float32),
        "be0": jnp.zeros((1, E), jnp.float32),
        "g1": jnp.ones((1, E), jnp.float32),
        "be1": jnp.zeros((1, E), jnp.float32),
    }


if __name__ == "__main__":
    key = jax.random.PRNGKey(0)
    kx, kp = jax.random.split(key)
    x = jax.random.normal(kx, (SEQ, BATCH, HIDDEN), jnp.float32)   # (L, N, E)
    params = make_params(kp, HIDDEN)
    param_slab = pack_params(params)

    out = jax.block_until_ready(transformer_encoder_layer(x, param_slab))
    ref = jax.block_until_ready(reference(x, params))

    assert out.shape == (SEQ, BATCH, HIDDEN), out.shape
    err = float(jnp.max(jnp.abs(out - ref)))
    assert jnp.allclose(out, ref, atol=1e-4, rtol=1e-4), err
    print("KERNEL_OK")
</pallas_src>

<mosaic_0001>
module attributes {stable_mosaic.version = 11 : i64} {
  func.func @encoder_layer_kernel(%arg0: i32, %arg1: memref<16x32xf32, #tpu.memory_space<vmem>>, %arg2: memref<72x128xf32, #tpu.memory_space<vmem>>, %arg3: memref<16x32xf32, #tpu.memory_space<vmem>>) attributes {dimension_semantics = [#tpu.dimension_semantics<arbitrary>], iteration_bounds = array<i64: 1>, scalar_prefetch = 0 : i64, scratch_operands = 0 : i64, tpu.core_type = #tpu.core_type<tc>, window_params = [{pipeline_mode = #tpu.pipeline_mode<synchronous>, transform_indices = @transform_0, window_bounds = array<i64: 16, 32>}, {pipeline_mode = #tpu.pipeline_mode<synchronous>, transform_indices = @transform_1, window_bounds = array<i64: 72, 128>}, {pipeline_mode = #tpu.pipeline_mode<synchronous>, transform_indices = @transform_2, window_bounds = array<i64: 16, 32>}]} {
    %c0 = arith.constant 0 : index
    %c0_0 = arith.constant 0 : index
    %0 = vector.load %arg1[%c0, %c0_0] : memref<16x32xf32, #tpu.memory_space<vmem>>, vector<16x32xf32>
    %c0_1 = arith.constant 0 : index
    %c0_2 = arith.constant 0 : index
    %1 = vector.load %arg2[%c0_1, %c0_2] : memref<72x128xf32, #tpu.memory_space<vmem>>, vector<72x128xf32>
    %2 = vector.extract_strided_slice %1 {offsets = [0, 0], sizes = [32, 96], strides = [1, 1]} : vector<72x128xf32> to vector<32x96xf32>
    %3 = vector.extract_strided_slice %1 {offsets = [0, 96], sizes = [32, 32], strides = [1, 1]} : vector<72x128xf32> to vector<32x32xf32>
    %4 = vector.extract_strided_slice %1 {offsets = [32, 0], sizes = [32, 32], strides = [1, 1]} : vector<72x128xf32> to vector<32x32xf32>
    %5 = vector.extract_strided_slice %1 {offsets = [32, 32], sizes = [32, 32], strides = [1, 1]} : vector<72x128xf32> to vector<32x32xf32>
    %6 = vector.extract_strided_slice %1 {offsets = [64, 0], sizes = [1, 96], strides = [1, 1]} : vector<72x128xf32> to vector<1x96xf32>
    %7 = vector.extract_strided_slice %1 {offsets = [64, 96], sizes = [1, 32], strides = [1, 1]} : vector<72x128xf32> to vector<1x32xf32>
    %8 = vector.extract_strided_slice %1 {offsets = [65, 0], sizes = [1, 32], strides = [1, 1]} : vector<72x128xf32> to vector<1x32xf32>
    %9 = vector.extract_strided_slice %1 {offsets = [65, 32], sizes = [1, 32], strides = [1, 1]} : vector<72x128xf32> to vector<1x32xf32>
    %10 = vector.extract_strided_slice %1 {offsets = [65, 64], sizes = [1, 32], strides = [1, 1]} : vector<72x128xf32> to vector<1x32xf32>
    %11 = vector.extract_strided_slice %1 {offsets = [65, 96], sizes = [1, 32], strides = [1, 1]} : vector<72x128xf32> to vector<1x32xf32>
    %12 = vector.extract_strided_slice %1 {offsets = [66, 0], sizes = [1, 32], strides = [1, 1]} : vector<72x128xf32> to vector<1x32xf32>
    %13 = vector.extract_strided_slice %1 {offsets = [66, 32], sizes = [1, 32], strides = [1, 1]} : vector<72x128xf32> to vector<1x32xf32>
    %cst = arith.constant dense<0.000000e+00> : vector<16xf32>
    %14 = vector.multi_reduction <add>, %0, %cst [1] : vector<16x32xf32> to vector<16xf32>
    %15 = vector.shape_cast %14 : vector<16xf32> to vector<16x1xf32>
    %cst_3 = arith.constant 3.200000e+01 : f32
    %16 = vector.broadcast %cst_3 : f32 to vector<16x1xf32>
    %17 = arith.divf %15, %16 : vector<16x1xf32>
    %18 = vector.broadcast %17 : vector<16x1xf32> to vector<16x32xf32>
    %19 = arith.subf %0, %18 : vector<16x32xf32>
    %20 = arith.mulf %19, %19 : vector<16x32xf32>
    %cst_4 = arith.constant dense<0.000000e+00> : vector<16xf32>
    %21 = vector.multi_reduction <add>, %20, %cst_4 [1] : vector<16x32xf32> to vector<16xf32>
    %22 = vector.shape_cast %21 : vector<16xf32> to vector<16x1xf32>
    %cst_5 = arith.constant 3.200000e+01 : f32
    %23 = vector.broadcast %cst_5 : f32 to vector<16x1xf32>
    %24 = arith.divf %22, %23 : vector<16x1xf32>
    %cst_6 = arith.constant 9.99999974E-6 : f32
    %25 = vector.broadcast %cst_6 : f32 to vector<16x1xf32>
    %26 = arith.addf %24, %25 : vector<16x1xf32>
    %27 = math.rsqrt %26 : vector<16x1xf32>
    %28 = vector.broadcast %27 : vector<16x1xf32> to vector<16x32xf32>
    %29 = arith.mulf %19, %28 : vector<16x32xf32>
    %30 = vector.broadcast %10 : vector<1x32xf32> to vector<16x32xf32>
    %31 = arith.mulf %29, %30 : vector<16x32xf32>
    %32 = vector.broadcast %11 : vector<1x32xf32> to vector<16x32xf32>
    %33 = arith.addf %31, %32 : vector<16x32xf32>
    %cst_7 = arith.constant dense<0.000000e+00> : vector<16x96xf32>
    %34 = tpu.matmul %33, %2, %cst_7 {dimension_numbers = #tpu.dot_dimension_numbers<[1], [0], [0], [1], [0, 0, 1, 1], [], []>} : vector<16x32xf32>, vector<32x96xf32>, vector<16x96xf32> -> vector<16x96xf32>
    %35 = vector.broadcast %6 : vector<1x96xf32> to vector<16x96xf32>
    %36 = arith.addf %34, %35 : vector<16x96xf32>
    %37 = vector.extract_strided_slice %36 {offsets = [0, 0], sizes = [16, 32], strides = [1, 1]} : vector<16x96xf32> to vector<16x32xf32>
    %38 = vector.extract_strided_slice %36 {offsets = [0, 32], sizes = [16, 32], strides = [1, 1]} : vector<16x96xf32> to vector<16x32xf32>
    %39 = vector.extract_strided_slice %36 {offsets = [0, 64], sizes = [16, 32], strides = [1, 1]} : vector<16x96xf32> to vector<16x32xf32>
    %40 = tpu.iota {dimensions = array<i32: 0>} : vector<16x16xi32>
    %c2_i32 = arith.constant 2 : i32
    %c0_i32 = arith.constant 0 : i32
    %41 = arith.cmpi eq, %c2_i32, %c0_i32 : i32
    %c1_i32 = arith.constant 1 : i32
    %42 = arith.select %41, %c1_i32, %c2_i32 : i32
    %43 = vector.broadcast %42 : i32 to vector<16x16xi32>
    %44 = arith.remsi %40, %43 : vector<16x16xi32>
    %c0_i32_8 = arith.constant 0 : i32
    %45 = vector.broadcast %c0_i32_8 : i32 to vector<16x16xi32>
    %46 = arith.cmpi ne, %44, %45 : vector<16x16xi32>
    %c0_i32_9 = arith.constant 0 : i32
    %47 = vector.broadcast %c0_i32_9 : i32 to vector<16x16xi32>
    %48 = arith.cmpi slt, %44, %47 : vector<16x16xi32>
    %c0_i32_10 = arith.constant 0 : i32
    %49 = arith.cmpi slt, %42, %c0_i32_10 : i32
    %50 = vector.broadcast %49 : i1 to vector<16x16xi1>
    %51 = vector.broadcast %50 : vector<16x16xi1> to vector<16x16xi1>
    %52 = arith.xori %48, %51 : vector<16x16xi1>
    %53 = arith.andi %52, %46 : vector<16x16xi1>
    %54 = vector.broadcast %42 : i32 to vector<16x16xi32>
    %55 = arith.addi %44, %54 : vector<16x16xi32>
    %56 = arith.select %53, %55, %44 : vector<16x16xi1>, vector<16x16xi32>
    %57 = tpu.iota {dimensions = array<i32: 1>} : vector<16x16xi32>
    %c2_i32_11 = arith.constant 2 : i32
    %c0_i32_12 = arith.constant 0 : i32
    %58 = arith.cmpi eq, %c2_i32_11, %c0_i32_12 : i32
    %c1_i32_13 = arith.constant 1 : i32
    %59 = arith.select %58, %c1_i32_13, %c2_i32_11 : i32
    %60 = vector.broadcast %59 : i32 to vector<16x16xi32>
    %61 = arith.remsi %57, %60 : vector<16x16xi32>
    %c0_i32_14 = arith.constant 0 : i32
    %62 = vector.broadcast %c0_i32_14 : i32 to vector<16x16xi32>
    %63 = arith.cmpi ne, %61, %62 : vector<16x16xi32>
    %c0_i32_15 = arith.constant 0 : i32
    %64 = vector.broadcast %c0_i32_15 : i32 to vector<16x16xi32>
    %65 = arith.cmpi slt, %61, %64 : vector<16x16xi32>
    %c0_i32_16 = arith.constant 0 : i32
    %66 = arith.cmpi slt, %59, %c0_i32_16 : i32
    %67 = vector.broadcast %66 : i1 to vector<16x16xi1>
    %68 = vector.broadcast %67 : vector<16x16xi1> to vector<16x16xi1>
    %69 = arith.xori %65, %68 : vector<16x16xi1>
    %70 = arith.andi %69, %63 : vector<16x16xi1>
    %71 = vector.broadcast %59 : i32 to vector<16x16xi32>
    %72 = arith.addi %61, %71 : vector<16x16xi32>
    %73 = arith.select %70, %72, %61 : vector<16x16xi1>, vector<16x16xi32>
    %74 = arith.cmpi eq, %56, %73 : vector<16x16xi32>
    %75 = vector.extract_strided_slice %37 {offsets = [0, 0], sizes = [16, 8], strides = [1, 1]} : vector<16x32xf32> to vector<16x8xf32>
    %76 = vector.extract_strided_slice %38 {offsets = [0, 0], sizes = [16, 8], strides = [1, 1]} : vector<16x32xf32> to vector<16x8xf32>
    %77 = vector.extract_strided_slice %39 {offsets = [0, 0], sizes = [16, 8], strides = [1, 1]} : vector<16x32xf32> to vector<16x8xf32>
    %cst_17 = arith.constant dense<0.000000e+00> : vector<16x16xf32>
    %78 = tpu.matmul %75, %76, %cst_17 {dimension_numbers = #tpu.dot_dimension_numbers<[1], [1], [0], [0], [0, 0, 1, 0], [], []>} : vector<16x8xf32>, vector<16x8xf32>, vector<16x16xf32> -> vector<16x16xf32>
    %cst_18 = arith.constant -1.000000e+30 : f32
    %79 = vector.broadcast %cst_18 : f32 to vector<16x16xf32>
    %80 = arith.select %74, %78, %79 : vector<16x16xi1>, vector<16x16xf32>
    %cst_19 = arith.constant dense<0xFF800000> : vector<16xf32>
    %81 = vector.multi_reduction <maximumf>, %80, %cst_19 [1] : vector<16x16xf32> to vector<16xf32>
    %82 = vector.shape_cast %81 : vector<16xf32> to vector<16x1xf32>
    %83 = vector.broadcast %82 : vector<16x1xf32> to vector<16x16xf32>
    %84 = arith.subf %80, %83 : vector<16x16xf32>
    %85 = math.exp %84 : vector<16x16xf32>
    %cst_20 = arith.constant dense<0.000000e+00> : vector<16xf32>
    %86 = vector.multi_reduction <add>, %85, %cst_20 [1] : vector<16x16xf32> to vector<16xf32>
    %87 = vector.shape_cast %86 : vector<16xf32> to vector<16x1xf32>
    %88 = vector.broadcast %87 : vector<16x1xf32> to vector<16x16xf32>
    %89 = arith.divf %85, %88 : vector<16x16xf32>
    %cst_21 = arith.constant dense<0.000000e+00> : vector<16x8xf32>
    %90 = tpu.matmul %89, %77, %cst_21 {dimension_numbers = #tpu.dot_dimension_numbers<[1], [0], [0], [1], [0, 0, 1, 1], [], []>} : vector<16x16xf32>, vector<16x8xf32>, vector<16x8xf32> -> vector<16x8xf32>
    %91 = vector.extract_strided_slice %37 {offsets = [0, 8], sizes = [16, 8], strides = [1, 1]} : vector<16x32xf32> to vector<16x8xf32>
    %92 = vector.extract_strided_slice %38 {offsets = [0, 8], sizes = [16, 8], strides = [1, 1]} : vector<16x32xf32> to vector<16x8xf32>
    %93 = vector.extract_strided_slice %39 {offsets = [0, 8], sizes = [16, 8], strides = [1, 1]} : vector<16x32xf32> to vector<16x8xf32>
    %cst_22 = arith.constant dense<0.000000e+00> : vector<16x16xf32>
    %94 = tpu.matmul %91, %92, %cst_22 {dimension_numbers = #tpu.dot_dimension_numbers<[1], [1], [0], [0], [0, 0, 1, 0], [], []>} : vector<16x8xf32>, vector<16x8xf32>, vector<16x16xf32> -> vector<16x16xf32>
    %cst_23 = arith.constant -1.000000e+30 : f32
    %95 = vector.broadcast %cst_23 : f32 to vector<16x16xf32>
    %96 = arith.select %74, %94, %95 : vector<16x16xi1>, vector<16x16xf32>
    %cst_24 = arith.constant dense<0xFF800000> : vector<16xf32>
    %97 = vector.multi_reduction <maximumf>, %96, %cst_24 [1] : vector<16x16xf32> to vector<16xf32>
    %98 = vector.shape_cast %97 : vector<16xf32> to vector<16x1xf32>
    %99 = vector.broadcast %98 : vector<16x1xf32> to vector<16x16xf32>
    %100 = arith.subf %96, %99 : vector<16x16xf32>
    %101 = math.exp %100 : vector<16x16xf32>
    %cst_25 = arith.constant dense<0.000000e+00> : vector<16xf32>
    %102 = vector.multi_reduction <add>, %101, %cst_25 [1] : vector<16x16xf32> to vector<16xf32>
    %103 = vector.shape_cast %102 : vector<16xf32> to vector<16x1xf32>
    %104 = vector.broadcast %103 : vector<16x1xf32> to vector<16x16xf32>
    %105 = arith.divf %101, %104 : vector<16x16xf32>
    %cst_26 = arith.constant dense<0.000000e+00> : vector<16x8xf32>
    %106 = tpu.matmul %105, %93, %cst_26 {dimension_numbers = #tpu.dot_dimension_numbers<[1], [0], [0], [1], [0, 0, 1, 1], [], []>} : vector<16x16xf32>, vector<16x8xf32>, vector<16x8xf32> -> vector<16x8xf32>
    %107 = vector.extract_strided_slice %37 {offsets = [0, 16], sizes = [16, 8], strides = [1, 1]} : vector<16x32xf32> to vector<16x8xf32>
    %108 = vector.extract_strided_slice %38 {offsets = [0, 16], sizes = [16, 8], strides = [1, 1]} : vector<16x32xf32> to vector<16x8xf32>
    %109 = vector.extract_strided_slice %39 {offsets = [0, 16], sizes = [16, 8], strides = [1, 1]} : vector<16x32xf32> to vector<16x8xf32>
    %cst_27 = arith.constant dense<0.000000e+00> : vector<16x16xf32>
    %110 = tpu.matmul %107, %108, %cst_27 {dimension_numbers = #tpu.dot_dimension_numbers<[1], [1], [0], [0], [0, 0, 1, 0], [], []>} : vector<16x8xf32>, vector<16x8xf32>, vector<16x16xf32> -> vector<16x16xf32>
    %cst_28 = arith.constant -1.000000e+30 : f32
    %111 = vector.broadcast %cst_28 : f32 to vector<16x16xf32>
    %112 = arith.select %74, %110, %111 : vector<16x16xi1>, vector<16x16xf32>
    %cst_29 = arith.constant dense<0xFF800000> : vector<16xf32>
    %113 = vector.multi_reduction <maximumf>, %112, %cst_29 [1] : vector<16x16xf32> to vector<16xf32>
    %114 = vector.shape_cast %113 : vector<16xf32> to vector<16x1xf32>
    %115 = vector.broadcast %114 : vector<16x1xf32> to vector<16x16xf32>
    %116 = arith.subf %112, %115 : vector<16x16xf32>
    %117 = math.exp %116 : vector<16x16xf32>
    %cst_30 = arith.constant dense<0.000000e+00> : vector<16xf32>
    %118 = vector.multi_reduction <add>, %117, %cst_30 [1] : vector<16x16xf32> to vector<16xf32>
    %119 = vector.shape_cast %118 : vector<16xf32> to vector<16x1xf32>
    %120 = vector.broadcast %119 : vector<16x1xf32> to vector<16x16xf32>
    %121 = arith.divf %117, %120 : vector<16x16xf32>
    %cst_31 = arith.constant dense<0.000000e+00> : vector<16x8xf32>
    %122 = tpu.matmul %121, %109, %cst_31 {dimension_numbers = #tpu.dot_dimension_numbers<[1], [0], [0], [1], [0, 0, 1, 1], [], []>} : vector<16x16xf32>, vector<16x8xf32>, vector<16x8xf32> -> vector<16x8xf32>
    %123 = vector.extract_strided_slice %37 {offsets = [0, 24], sizes = [16, 8], strides = [1, 1]} : vector<16x32xf32> to vector<16x8xf32>
    %124 = vector.extract_strided_slice %38 {offsets = [0, 24], sizes = [16, 8], strides = [1, 1]} : vector<16x32xf32> to vector<16x8xf32>
    %125 = vector.extract_strided_slice %39 {offsets = [0, 24], sizes = [16, 8], strides = [1, 1]} : vector<16x32xf32> to vector<16x8xf32>
    %cst_32 = arith.constant dense<0.000000e+00> : vector<16x16xf32>
    %126 = tpu.matmul %123, %124, %cst_32 {dimension_numbers = #tpu.dot_dimension_numbers<[1], [1], [0], [0], [0, 0, 1, 0], [], []>} : vector<16x8xf32>, vector<16x8xf32>, vector<16x16xf32> -> vector<16x16xf32>
    %cst_33 = arith.constant -1.000000e+30 : f32
    %127 = vector.broadcast %cst_33 : f32 to vector<16x16xf32>
    %128 = arith.select %74, %126, %127 : vector<16x16xi1>, vector<16x16xf32>
    %cst_34 = arith.constant dense<0xFF800000> : vector<16xf32>
    %129 = vector.multi_reduction <maximumf>, %128, %cst_34 [1] : vector<16x16xf32> to vector<16xf32>
    %130 = vector.shape_cast %129 : vector<16xf32> to vector<16x1xf32>
    %131 = vector.broadcast %130 : vector<16x1xf32> to vector<16x16xf32>
    %132 = arith.subf %128, %131 : vector<16x16xf32>
    %133 = math.exp %132 : vector<16x16xf32>
    %cst_35 = arith.constant dense<0.000000e+00> : vector<16xf32>
    %134 = vector.multi_reduction <add>, %133, %cst_35 [1] : vector<16x16xf32> to vector<16xf32>
    %135 = vector.shape_cast %134 : vector<16xf32> to vector<16x1xf32>
    %136 = vector.broadcast %135 : vector<16x1xf32> to vector<16x16xf32>
    %137 = arith.divf %133, %136 : vector<16x16xf32>
    %cst_36 = arith.constant dense<0.000000e+00> : vector<16x8xf32>
    %138 = tpu.matmul %137, %125, %cst_36 {dimension_numbers = #tpu.dot_dimension_numbers<[1], [0], [0], [1], [0, 0, 1, 1], [], []>} : vector<16x16xf32>, vector<16x8xf32>, vector<16x8xf32> -> vector<16x8xf32>
    %139 = tpu.concatenate %90, %106, %122, %138 in 1 : vector<16x8xf32>, vector<16x8xf32>, vector<16x8xf32>, vector<16x8xf32> -> vector<16x32xf32>
    %cst_37 = arith.constant dense<0.000000e+00> : vector<16x32xf32>
    %140 = tpu.matmul %139, %3, %cst_37 {dimension_numbers = #tpu.dot_dimension_numbers<[1], [0], [0], [1], [0, 0, 1, 1], [], []>} : vector<16x32xf32>, vector<32x32xf32>, vector<16x32xf32> -> vector<16x32xf32>
    %141 = vector.broadcast %7 : vector<1x32xf32> to vector<16x32xf32>
    %142 = arith.addf %140, %141 : vector<16x32xf32>
    %143 = arith.addf %0, %142 : vector<16x32xf32>
    %cst_38 = arith.constant dense<0.000000e+00> : vector<16xf32>
    %144 = vector.multi_reduction <add>, %143, %cst_38 [1] : vector<16x32xf32> to vector<16xf32>
    %145 = vector.shape_cast %144 : vector<16xf32> to vector<16x1xf32>
    %cst_39 = arith.constant 3.200000e+01 : f32
    %146 = vector.broadcast %cst_39 : f32 to vector<16x1xf32>
    %147 = arith.divf %145, %146 : vector<16x1xf32>
    %148 = vector.broadcast %147 : vector<16x1xf32> to vector<16x32xf32>
    %149 = arith.subf %143, %148 : vector<16x32xf32>
    %150 = arith.mulf %149, %149 : vector<16x32xf32>
    %cst_40 = arith.constant dense<0.000000e+00> : vector<16xf32>
    %151 = vector.multi_reduction <add>, %150, %cst_40 [1] : vector<16x32xf32> to vector<16xf32>
    %152 = vector.shape_cast %151 : vector<16xf32> to vector<16x1xf32>
    %cst_41 = arith.constant 3.200000e+01 : f32
    %153 = vector.broadcast %cst_41 : f32 to vector<16x1xf32>
    %154 = arith.divf %152, %153 : vector<16x1xf32>
    %cst_42 = arith.constant 9.99999974E-6 : f32
    %155 = vector.broadcast %cst_42 : f32 to vector<16x1xf32>
    %156 = arith.addf %154, %155 : vector<16x1xf32>
    %157 = math.rsqrt %156 : vector<16x1xf32>
    %158 = vector.broadcast %157 : vector<16x1xf32> to vector<16x32xf32>
    %159 = arith.mulf %149, %158 : vector<16x32xf32>
    %160 = vector.broadcast %12 : vector<1x32xf32> to vector<16x32xf32>
    %161 = arith.mulf %159, %160 : vector<16x32xf32>
    %162 = vector.broadcast %13 : vector<1x32xf32> to vector<16x32xf32>
    %163 = arith.addf %161, %162 : vector<16x32xf32>
    %cst_43 = arith.constant dense<0.000000e+00> : vector<16x32xf32>
    %164 = tpu.matmul %163, %4, %cst_43 {dimension_numbers = #tpu.dot_dimension_numbers<[1], [0], [0], [1], [0, 0, 1, 1], [], []>} : vector<16x32xf32>, vector<32x32xf32>, vector<16x32xf32> -> vector<16x32xf32>
    %165 = vector.broadcast %8 : vector<1x32xf32> to vector<16x32xf32>
    %166 = arith.addf %164, %165 : vector<16x32xf32>
    %cst_44 = arith.constant 0.000000e+00 : f32
    %167 = vector.broadcast %cst_44 : f32 to vector<16x32xf32>
    %168 = arith.maximumf %166, %167 : vector<16x32xf32>
    %cst_45 = arith.constant dense<0.000000e+00> : vector<16x32xf32>
    %169 = tpu.matmul %168, %5, %cst_45 {dimension_numbers = #tpu.dot_dimension_numbers<[1], [0], [0], [1], [0, 0, 1, 1], [], []>} : vector<16x32xf32>, vector<32x32xf32>, vector<16x32xf32> -> vector<16x32xf32>
    %170 = vector.broadcast %9 : vector<1x32xf32> to vector<16x32xf32>
    %171 = arith.addf %169, %170 : vector<16x32xf32>
    %172 = arith.addf %143, %171 : vector<16x32xf32>
    %c0_46 = arith.constant 0 : index
    %c0_47 = arith.constant 0 : index
    %173 = vector.load %arg3[%c0_46, %c0_47] : memref<16x32xf32, #tpu.memory_space<vmem>>, vector<16x32xf32>
    tpu.vector_store %arg3[%c0_46, %c0_47], %172 {strides = array<i32>} : memref<16x32xf32, #tpu.memory_space<vmem>>, vector<16x32xf32>,
    return
  }
  func.func @transform_0(%arg0: i32) -> (i32, i32) {
    %c0_i32 = arith.constant 0 : i32
    %c0_i32_0 = arith.constant 0 : i32
    %c0_i32_1 = arith.constant 0 : i32
    return %c0_i32, %c0_i32_0 : i32, i32
  }
  func.func @transform_1(%arg0: i32) -> (i32, i32) {
    %c0_i32 = arith.constant 0 : i32
    %c0_i32_0 = arith.constant 0 : i32
    %c0_i32_1 = arith.constant 0 : i32
    return %c0_i32, %c0_i32_0 : i32, i32
  }
  func.func @transform_2(%arg0: i32) -> (i32, i32) {
    %c0_i32 = arith.constant 0 : i32
    %c0_i32_0 = arith.constant 0 : i32
    %c0_i32_1 = arith.constant 0 : i32
    return %c0_i32, %c0_i32_0 : i32, i32
  }
}

</mosaic_0001>

<bundles_post_ra>
// kernel: transformer_encoder_layer.1
= control target key start
LH: loop header
LB: loop body
LE: loop exit
PB: predicated region body
PF: predicated region fallthrough
CT: control target
= control target key end

     0   :  { %7 = vsyncpa [#allocation3], 0  ;;  %s2151_s0 = inlined_call_operand.hbm [shape: f32[16,32], index: 0, kind: input, shape index: {}]   ;;  %s2152_s1 = inlined_call_operand.hbm [shape: f32[72,128], index: 1, kind: input, shape index: {}]   ;;  %s2153_s2 = inlined_call_operand.hbm [shape: f32[16,32], index: 2, kind: output, shape index: {}]  }
   0x1   :  { %8 = vsyncpa [#allocation6], 0 }
   0x2   :  { %9 = vsyncpa [#allocation4], 0  ;;  %s1858_s9 = smov [#allocation2]   ;;  %s1786_s13 = scalar_lea.hbm %s2151_s0, 256 }
   0x3   :  { %s15_s10 = sshll.u32 %s1858_s9, 4  ;;  %p1787_p0 = scmp.ne.s32.totalorder %s2151_s0, %s1786_s13  ;;  %s16_s10 = int_to_ptr.vmem [resolvable:$true] %s15_s10 }
   0x4   :  { %p1790_p1 = scmp.lt.u32.totalorder %s1786_s13, %s2151_s0 }
   0x6   :  { %p1792_p2 = pnand %p1790_p1, %p1787_p0 }
   0x8   :  { %1795 = shalt.err (!%p1792_p2)
}
   0x9   :  { %s1796_s18 = scalar_lea.vmem %s16_s10, 256  ;;  %p1801_p4 = scmp.lt.s32.totalorder %s16_s10, %s16_s10 }
   0xa   :  { %p1797_p3 = scmp.ne.s32.totalorder %s16_s10, %s1796_s18  ;;  %p1802_p5 = scmp.lt.s32.totalorder %s1796_s18, %s1796_s18 }
   0xc   :  { %p1803_p6 = por %p1802_p5, %p1801_p4 }
   0xe   :  { %p1804_p7 = pnand %p1803_p6, %p1797_p3 }
  0x10   :  { %1807 = shalt.err (!%p1804_p7)
}
  0x11   :  { %s1859_s19 = smov 128   ;;  %s1860_s20 = smov 8  }
  0x12   :  { %21 = dma.hbm_to_vmem [thread:$0]  %s2151_s0, 256, %s16_s10, [#allocation3], %s1859_s19, %s1859_s19, %s1860_s20  }
  0x13   :  { %s1861_s23 = smov [#allocation5]   ;;  %s1808_s27 = scalar_lea.hbm %s2152_s1, 1152 }
  0x14   :  { %s27_s24 = sshll.u32 %s1861_s23, 4  ;;  %p1809_p8 = scmp.ne.s32.totalorder %s2152_s1, %s1808_s27  ;;  %s28_s24 = int_to_ptr.vmem [resolvable:$true] %s27_s24 }
  0x15   :  { %p1812_p9 = scmp.lt.u32.totalorder %s1808_s27, %s2152_s1 }
  0x17   :  { %p1814_p10 = pnand %p1812_p9, %p1809_p8 }
  0x19   :  { %1817 = shalt.err (!%p1814_p10)
}
  0x1a   :  { %s1818_s4 = scalar_lea.vmem %s28_s24, 1152  ;;  %p1823_p12 = scmp.lt.s32.totalorder %s28_s24, %s28_s24 }
  0x1b   :  { %p1819_p11 = scmp.ne.s32.totalorder %s28_s24, %s1818_s4  ;;  %p1824_p13 = scmp.lt.s32.totalorder %s1818_s4, %s1818_s4 }
  0x1d   :  { %p1825_p0 = por %p1824_p13, %p1823_p12 }
  0x1f   :  { %p1826_p1 = pnand %p1825_p0, %p1819_p11 }
  0x21   :  { %1829 = shalt.err (!%p1826_p1)
}
  0x22   :  { %33 = dma.hbm_to_vmem [thread:$0]  %s2152_s1, 1152, %s28_s24, [#allocation6], %s1859_s19, %s1859_s19, %s1860_s20  }
  0x23   :  { %1852 = dma.done.wait [#allocation3], 256  }
  0x24   :  { %1853 = vsyncadd [#allocation3], 4294967040 }
  0x25   :  { %1854 = dma.done.wait [#allocation6], 1152  }
  0x26   :  { %1855 = vsyncadd [#allocation6], 4294966144  ;;  %vm51_vm0 = vcmask 261120   ;;  %v1922_v0 = vld [vmem:[#allocation2] sm:$0xff]  ;;  %v1924_v1 = vld [vmem:[#allocation2 + $0x8] sm:$0xff]  ;;  %v79_v4 = vlaneseq  ;;  %s1862_s1 = smov 64  }
  0x27   :  { %v52_v2 = vsel %vm51_vm0, %v1922_v0, 0.0  ;;  %v55_v3 = vsel %vm51_vm0, %v1924_v1, 0.0  ;;  %v1933_v6 = vld [vmem:[#allocation5 + $0x40] sm:$0xff]  ;;  %s1863_s6 = smov 32   ;;  %v1949_v20 = vld [vmem:[#allocation5 + $0x8] sm:$0xff]  ;;  %v1953_v22 = vld [vmem:[#allocation5 + $0x10] sm:$0xff] }
  0x28   :  { %53 = vadd.xlane.f32.xlu0 %v52_v2  ;;  %v1931_v5 = vshrl.u32 %v79_v4, 7  ;;  %v1947_v19 = vld [vmem:[#allocation5] sm:$0xff]  ;;  %v1955_v23 = vld [vmem:[#allocation5 + $0x18] sm:$0xff]  ;;  %vm228_vm1 = vcmask 64512   ;;  %s1864_s7 = smov 96   ;;  %v207_v55 = vand.u32 127, %v79_v4 }
  0x29   :  { %v1595_v21 = vpack.c.bf16 %v1949_v20, %v1947_v19  ;;  %v1599_v24 = vpack.c.bf16 %v1955_v23, %v1953_v22  ;;  %v1726_v25 = vpack.i.bf16 %v1949_v20, %v1947_v19  ;;  %vm1983_vm2 = vmpackc.low %vm228_vm1, %vm228_vm1  ;;  %vm314_vm5 = vcmask 130048   ;;  %s1865_s8 = smov 120   ;;  %s1866_s9 = smov 88  }
  0x2a   :  { %v81_v7 = vsub.s32 1, %v1931_v5  ;;  %v96_v42 = vsub.s32 0, %v1931_v5  ;;  %v181_v54 = vadd.s32 8, %v1931_v5  ;;  %v212_v57 = vand.u32 1, %v207_v55  ;;  %s1867_s10 = smov 56   ;;  %s1868_s11 = smov 112  }
  0x2b   :  { %1596 = vmatprep.subr.bf16.mxu0 %v1595_v21  ;;  %v186_v58 = vand.u32 1, %v1931_v5  ;;  %s1869_s12 = smov 80   ;;  %s1870_s13 = smov 48   ;;  %vm1058_vm6 = vcmask 195584  }
  0x2c   :  { %56 = vadd.xlane.f32.xlu0 %v55_v3  ;;  %v1937_v8 = vrot.slane %v1933_v6, %v81_v7  ;;  %1598 = vmatpush3.bf16.msra.mxu0 %v1595_v21  ;;  %v1965_v43 = vrot.slane %v1933_v6, %v96_v42  ;;  %v193_v56 = vand.u32 1, %v181_v54  ;;  %s1871_s14 = smov 104   ;;  %s1872_s15 = smov 72  }
  0x2d   :  { %1600 = vmatprep.subr.bf16.mxu0 %v1599_v24  ;;  %vm2000_vm4 = vcmp.eq.s32.totalorder %v186_v58, %v212_v57  ;;  %s1873_s16 = smov 40   ;;  %s1874_s17 = smov 16  }
  0x2e   :  { %vm1996_vm3 = vcmp.eq.s32.totalorder %v193_v56, %v212_v57  ;;  %s1875_s18 = smov 24   ;;  %s1876_s21 = smov [#allocation7]  }
  0x2f   :  { %s1394_s22 = sshll.u32 %s1876_s21, 4  ;;  %s1395_s22 = int_to_ptr.vmem [resolvable:$true] %s1394_s22 }
  0x30   :  { %1602 = vmatpush3.bf16.msra.mxu0 %v1599_v24  ;;  %s1830_s23 = scalar_lea.vmem %s1395_s22, 256  ;;  %p1835_p3 = scmp.lt.s32.totalorder %s1395_s22, %s1395_s22 }
  0x31   :  { %p1831_p2 = scmp.ne.s32.totalorder %s1395_s22, %s1830_s23  ;;  %p1836_p4 = scmp.lt.s32.totalorder %s1830_s23, %s1830_s23 }
  0x33   :  { %p1837_p5 = por %p1836_p4, %p1835_p3 }
  0x35   :  { %p1838_p6 = pnand %p1837_p5, %p1831_p2 }
  0x42   :  { %84 = vrot.lane.b32.xlu0 %v1937_v8, %s1862_s1 }
  0xb5   :  { %v54_v9 = vpop.xlane.xlu0 %53 }
  0xb6   :  { %v59_v10 = vmul.f32 0.03125, %v54_v9 }
  0xb8   :  { %v61_v11 = vsub.f32 %v1922_v0, %v59_v10 }
  0xb9   :  { %v57_v12 = vpop.xlane.xlu0 %56 }
  0xba   :  { %v60_v13 = vmul.f32 0.03125, %v57_v12  ;;  %v63_v14 = vmul.f32 %v61_v11, %v61_v11 }
  0xbc   :  { %v62_v15 = vsub.f32 %v1924_v1, %v60_v13  ;;  %v65_v16 = vsel %vm51_vm0, %v63_v14, 0.0 }
  0xbd   :  { %66 = vadd.xlane.f32.xlu1 %v65_v16  ;;  %v85_v33 = vpop.permute.xlu0 %84 }
  0xbe   :  { %v64_v17 = vmul.f32 %v62_v15, %v62_v15 }
  0xc0   :  { %v68_v18 = vsel %vm51_vm0, %v64_v17, 0.0 }
  0xc1   :  { %69 = vadd.xlane.f32.xlu1 %v68_v18 }
  0xd2   :  { %89 = vrot.lane.b32.xlu1 %v1937_v8, %s1863_s6 }
 0x14a   :  { %v67_v26 = vpop.xlane.xlu1 %66 }
 0x14b   :  { %v71_v27 = vmul.f32 0.03125, %v67_v26 }
 0x14d   :  { %v73_v28 = vadd.f32 1e-05, %v71_v27 }
 0x14e   :  { %v70_v29 = vpop.xlane.xlu1 %69 }
 0x14f   :  { %1746 = vrsqrt.f32 %v73_v28  ;;  %v72_v30 = vmul.f32 0.03125, %v70_v29 }
 0x151   :  { %v74_v31 = vadd.f32 1e-05, %v72_v30 }
 0x152   :  { %v90_v35 = vpop.permute.xlu1 %89 }
 0x153   :  { %1748 = vrsqrt.f32 %v74_v31 }
 0x159   :  { %v1747_v32 = vpop.eup %1746 }
 0x15a   :  { %v77_v34 = vmul.f32 %v1747_v32, %v61_v11 }
 0x15c   :  { %v87_v36 = vmul.f32 %v85_v33, %v77_v34 }
 0x15d   :  { %v1749_v37 = vpop.eup %1748 }
 0x15e   :  { %v78_v38 = vmul.f32 %v1749_v37, %v62_v15  ;;  %v92_v39 = vadd.f32 %v90_v35, %v87_v36 }
 0x160   :  { %v88_v40 = vmul.f32 %v85_v33, %v78_v38  ;;  %1503 = vmatprep.mubr.msk.f32.mxu0 %vm51_vm0, %v92_v39 }
 0x162   :  { %v93_v41 = vadd.f32 %v90_v35, %v88_v40 }
 0x164   :  { %1504 = vmatmul.mubr.msk.f32.vlgmr.msra.gmra.mrb[0].mxu0 %vm51_vm0, %v93_v41 }
 0x237   :  { %v1505_v44 = vpop.f32.mrb[0].mxu0 }
 0x238   :  { %v1968_v45 = vadd.f32 %v1505_v44, %v1965_v43  ;;  %v170_v46 = vpop.f32.mrb[1].mxu0 }
 0x239   :  { %v1971_v47 = vadd.f32 %v170_v46, %v1965_v43 }
 0x23b   :  { %1510 = vmatprep.mubr.msk.f32.mxu1 %vm228_vm1, %v1971_v47  ;;  %v1977_v48 = vpack.i.bf16 %v1968_v45, %v1971_v47 }
 0x23d   :  { %1687 = vrot.lane.b32.xlu1 %v1977_v48, %s1864_s7 }
 0x2af   :  { %v1688_v49 = vpop.permute.xlu1 %1687 }
 0x2b0   :  { %v1690_v50 = vunpack.i.h.bf16 %v1688_v49  ;;  %v1689_v51 = vunpack.i.l.bf16 %v1688_v49 }
 0x2b2   :  { %v1603_v53 = vpack.c.bf16 %v1690_v50, %v1689_v51 }
 0x2b4   :  { %1605 = vmatprep.subr.msk.bf16.mxu1 %vm1983_vm2, %v1603_v53 }
 0x2b5   :  { %1608 = vmatpush3.bf16.xpose.msk.msra.mxu1 %vm1983_vm2, %v1603_v53 }
 0x2bc   :  { %1511 = vmatmul.mubr.msk.f32.vlgmr.msra.gmra.mrb[0].mxu1 %vm228_vm1, %v1968_v45 }
 0x38f   :  { %v1512_v61 = vpop.f32.mrb[0].mxu1 }
 0x390   :  { %v313_v62 = vsel %vm1996_vm3, %v1512_v61, -1e+30  ;;  %v303_v63 = vpop.f32.mrb[1].mxu1 }
 0x391   :  { %v312_v2 = vsel %vm2000_vm4, %v303_v63, -1e+30  ;;  %v318_v3 = vsel %vm314_vm5, %v313_v62, -inf }
 0x392   :  { %319 = vmax.xlane.f32.xlu0 %v318_v3  ;;  %v315_v4 = vsel %vm314_vm5, %v312_v2, -inf }
 0x393   :  { %316 = vmax.xlane.f32.xlu1 %v315_v4 }
 0x3a4   :  { %1692 = vrot.lane.b32.xlu1 %v1977_v48, %s1862_s1 }
 0x3a8   :  { %424 = vrot.lane.b32.xlu1 %v1971_v47, %s1865_s8 }
 0x3ac   :  { %426 = vrot.lane.b32.xlu1 %v1968_v45, %s1865_s8 }
 0x41f   :  { %v320_v7 = vpop.xlane.xlu0 %319 }
 0x420   :  { %v322_v9 = vsub.f32 %v313_v62, %v320_v7  ;;  %v317_v10 = vpop.xlane.xlu1 %316 }
 0x421   :  { %v321_v11 = vsub.f32 %v312_v2, %v317_v10 }
 0x422   :  { %v325_v12 = vmul.f32 1.442695, %v322_v9 }
 0x423   :  { %v323_v13 = vmul.f32 1.442695, %v321_v11 }
 0x424   :  { %1750 = vpow2.f32 %v325_v12  ;;  %v1693_v14 = vpop.permute.xlu1 %1692 }
 0x425   :  { %v1695_v15 = vunpack.i.h.bf16 %v1693_v14  ;;  %v1694_v16 = vunpack.i.l.bf16 %v1693_v14  ;;  %1752 = vpow2.f32 %v323_v13 }
 0x427   :  { %v1609_v17 = vpack.c.bf16 %v1695_v15, %v1694_v16 }
 0x428   :  { %v425_v37 = vpop.permute.xlu1 %424 }
 0x429   :  { %1610 = vmatprep.subr.bf16.mxu1 %v1609_v17 }
 0x42a   :  { %1612 = vmatpush3.bf16.msra.mxu1 %v1609_v17 }
 0x42c   :  { %v427_v38 = vpop.permute.xlu1 %426 }
 0x42e   :  { %v1751_v18 = vpop.eup %1750 }
 0x42f   :  { %v330_v21 = vsel %vm314_vm5, %v1751_v18, 0.0  ;;  %v1753_v24 = vpop.eup %1752 }
 0x430   :  { %331 = vadd.xlane.f32.xlu0 %v330_v21  ;;  %v327_v26 = vsel %vm314_vm5, %v1753_v24, 0.0 }
 0x434   :  { %328 = vadd.xlane.f32.xlu0 %v327_v26 }
 0x44a   :  { %1697 = vrot.lane.b32.xlu0 %v1977_v48, %s1866_s9 }
 0x4bd   :  { %v332_v27 = vpop.xlane.xlu0 %331 }
 0x4be   :  { %1754 = vrcp.f32 %v332_v27 }
 0x4c1   :  { %v329_v28 = vpop.xlane.xlu0 %328 }
 0x4c2   :  { %1756 = vrcp.f32 %v329_v28 }
 0x4c5   :  { %v1698_v29 = vpop.permute.xlu0 %1697 }
 0x4c6   :  { %v1700_v30 = vunpack.i.h.bf16 %v1698_v29  ;;  %v1699_v31 = vunpack.i.l.bf16 %v1698_v29 }
 0x4c8   :  { %v1613_v32 = vpack.c.bf16 %v1700_v30, %v1699_v31  ;;  %v1755_v33 = vpop.eup %1754 }
 0x4c9   :  { %v336_v36 = vmul.f32 %v1755_v33, %v1751_v18 }
 0x4ca   :  { %1615 = vmatprep.subr.msk.bf16.mxu1 %vm1983_vm2, %v1613_v32 }
 0x4cc   :  { %v1757_v34 = vpop.eup %1756 }
 0x4cd   :  { %v334_v35 = vmul.f32 %v1757_v34, %v1753_v24 }
 0x4cf   :  { %1517 = vmatprep.mubr.msk.f32.mxu1 %vm314_vm5, %v334_v35 }
 0x4d0   :  { %1518 = vmatmul.mubr.msk.f32.vlgmr.msra.gmra.mrb[2].mxu1 %vm314_vm5, %v336_v36 }
 0x4d1   :  { %1618 = vmatpush3.bf16.xpose.msk.msra.mxu1 %vm1983_vm2, %v1613_v32  ;;  %1524 = vmatprep.mubr.msk.f32.mxu1 %vm228_vm1, %v425_v37 }
 0x4d8   :  { %1525 = vmatmul.mubr.msk.f32.vlgmr.msra.gmra.mrb[4].mxu1 %vm228_vm1, %v427_v38 }
 0x5a3   :  { %v2025_v39 = vpop.f32.mrb[2].mxu1 }
 0x5a4   :  { %v2027_v40 = vpop.f32.mrb[3].mxu1 }
 0x5ab   :  { %v1526_v41 = vpop.f32.mrb[4].mxu1 }
 0x5ac   :  { %v516_v42 = vsel %vm1996_vm3, %v1526_v41, -1e+30  ;;  %v506_v44 = vpop.f32.mrb[5].mxu1 }
 0x5ad   :  { %v515_v46 = vsel %vm2000_vm4, %v506_v44, -1e+30  ;;  %v520_v49 = vsel %vm314_vm5, %v516_v42, -inf }
 0x5ae   :  { %521 = vmax.xlane.f32.xlu0 %v520_v49  ;;  %v517_v50 = vsel %vm314_vm5, %v515_v46, -inf }
 0x5af   :  { %518 = vmax.xlane.f32.xlu1 %v517_v50 }
 0x5c0   :  { %1702 = vrot.lane.b32.xlu1 %v1977_v48, %s1867_s10 }
 0x5c4   :  { %626 = vrot.lane.b32.xlu1 %v1971_v47, %s1868_s11 }
 0x5c8   :  { %628 = vrot.lane.b32.xlu1 %v1968_v45, %s1868_s11 }
 0x63b   :  { %v522_v51 = vpop.xlane.xlu0 %521 }
 0x63c   :  { %v524_v53 = vsub.f32 %v516_v42, %v522_v51  ;;  %v519_v54 = vpop.xlane.xlu1 %518 }
 0x63d   :  { %v523_v55 = vsub.f32 %v515_v46, %v519_v54 }
 0x63e   :  { %v527_v56 = vmul.f32 1.442695, %v524_v53 }
 0x63f   :  { %v525_v57 = vmul.f32 1.442695, %v523_v55 }
 0x640   :  { %1758 = vpow2.f32 %v527_v56  ;;  %v1703_v58 = vpop.permute.xlu1 %1702 }
 0x641   :  { %v1705_v61 = vunpack.i.h.bf16 %v1703_v58  ;;  %v1704_v62 = vunpack.i.l.bf16 %v1703_v58  ;;  %1760 = vpow2.f32 %v525_v57 }
 0x643   :  { %v1619_v63 = vpack.c.bf16 %v1705_v61, %v1704_v62 }
 0x644   :  { %v627_v21 = vpop.permute.xlu1 %626 }
 0x645   :  { %1620 = vmatprep.subr.bf16.mxu0 %v1619_v63 }
 0x646   :  { %1622 = vmatpush3.bf16.msra.mxu0 %v1619_v63 }
 0x648   :  { %v629_v24 = vpop.permute.xlu1 %628 }
 0x64a   :  { %v1759_v2 = vpop.eup %1758 }
 0x64b   :  { %v532_v3 = vsel %vm314_vm5, %v1759_v2, 0.0  ;;  %v1761_v4 = vpop.eup %1760 }
 0x64c   :  { %533 = vadd.xlane.f32.xlu0 %v532_v3  ;;  %v529_v7 = vsel %vm314_vm5, %v1761_v4, 0.0 }
 0x650   :  { %530 = vadd.xlane.f32.xlu0 %v529_v7 }
 0x666   :  { %1707 = vrot.lane.b32.xlu0 %v1977_v48, %s1869_s12 }
 0x6d9   :  { %v534_v9 = vpop.xlane.xlu0 %533 }
 0x6da   :  { %1762 = vrcp.f32 %v534_v9 }
 0x6dd   :  { %v531_v10 = vpop.xlane.xlu0 %530 }
 0x6de   :  { %1764 = vrcp.f32 %v531_v10 }
 0x6e1   :  { %v1708_v11 = vpop.permute.xlu0 %1707 }
 0x6e2   :  { %v1710_v12 = vunpack.i.h.bf16 %v1708_v11  ;;  %v1709_v13 = vunpack.i.l.bf16 %v1708_v11 }
 0x6e4   :  { %v1623_v14 = vpack.c.bf16 %v1710_v12, %v1709_v13  ;;  %v1763_v15 = vpop.eup %1762 }
 0x6e5   :  { %v538_v18 = vmul.f32 %v1763_v15, %v1759_v2  ;;  %v1731_v15 = vpack.i.bf16 %v1955_v23, %v1953_v22 }
 0x6e6   :  { %1625 = vmatprep.subr.msk.bf16.mxu0 %vm1983_vm2, %v1623_v14 }
 0x6e8   :  { %v1765_v16 = vpop.eup %1764 }
 0x6e9   :  { %v536_v17 = vmul.f32 %v1765_v16, %v1761_v4 }
 0x6eb   :  { %1531 = vmatprep.mubr.msk.f32.mxu0 %vm314_vm5, %v536_v17 }
 0x6ec   :  { %1532 = vmatmul.mubr.msk.f32.vlgmr.msra.gmra.mrb[2].mxu0 %vm314_vm5, %v538_v18 }
 0x6ed   :  { %1628 = vmatpush3.bf16.xpose.msk.msra.mxu0 %vm1983_vm2, %v1623_v14  ;;  %1538 = vmatprep.mubr.msk.f32.mxu0 %vm228_vm1, %v627_v21 }
 0x6f4   :  { %1539 = vmatmul.mubr.msk.f32.vlgmr.msra.gmra.mrb[4].mxu0 %vm228_vm1, %v629_v24 }
 0x7bf   :  { %v2049_v26 = vpop.f32.mrb[2].mxu0 }
 0x7c0   :  { %v2051_v27 = vpop.f32.mrb[3].mxu0 }
 0x7c7   :  { %v1540_v28 = vpop.f32.mrb[4].mxu0 }
 0x7c8   :  { %v718_v29 = vsel %vm1996_vm3, %v1540_v28, -1e+30  ;;  %v708_v30 = vpop.f32.mrb[5].mxu0 }
 0x7c9   :  { %v717_v31 = vsel %vm2000_vm4, %v708_v30, -1e+30  ;;  %v722_v32 = vsel %vm314_vm5, %v718_v29, -inf }
 0x7ca   :  { %723 = vmax.xlane.f32.xlu0 %v722_v32  ;;  %v719_v33 = vsel %vm314_vm5, %v717_v31, -inf }
 0x7cb   :  { %720 = vmax.xlane.f32.xlu1 %v719_v33 }
 0x7dc   :  { %1712 = vrot.lane.b32.xlu1 %v1977_v48, %s1870_s13 }
 0x7e0   :  { %828 = vrot.lane.b32.xlu1 %v1971_v47, %s1871_s14 }
 0x7e4   :  { %830 = vrot.lane.b32.xlu1 %v1968_v45, %s1871_s14 }
 0x857   :  { %v724_v34 = vpop.xlane.xlu0 %723 }
 0x858   :  { %v726_v35 = vsub.f32 %v718_v29, %v724_v34  ;;  %v721_v36 = vpop.xlane.xlu1 %720 }
 0x859   :  { %v725_v37 = vsub.f32 %v717_v31, %v721_v36 }
 0x85a   :  { %v729_v38 = vmul.f32 1.442695, %v726_v35 }
 0x85b   :  { %v727_v41 = vmul.f32 1.442695, %v725_v37 }
 0x85c   :  { %1766 = vpow2.f32 %v729_v38  ;;  %v1713_v42 = vpop.permute.xlu1 %1712 }
 0x85d   :  { %v1715_v44 = vunpack.i.h.bf16 %v1713_v42  ;;  %v1714_v46 = vunpack.i.l.bf16 %v1713_v42  ;;  %1768 = vpow2.f32 %v727_v41 }
 0x85f   :  { %v1629_v49 = vpack.c.bf16 %v1715_v44, %v1714_v46 }
 0x860   :  { %v829_v3 = vpop.permute.xlu1 %828 }
 0x861   :  { %1630 = vmatprep.subr.bf16.mxu1 %v1629_v49 }
 0x862   :  { %1632 = vmatpush3.bf16.msra.mxu1 %v1629_v49 }
 0x864   :  { %v831_v4 = vpop.permute.xlu1 %830 }
 0x866   :  { %v1767_v50 = vpop.eup %1766 }
 0x867   :  { %v734_v51 = vsel %vm314_vm5, %v1767_v50, 0.0  ;;  %v1769_v47 = vpop.eup %1768 }
 0x868   :  { %735 = vadd.xlane.f32.xlu0 %v734_v51  ;;  %v731_v45 = vsel %vm314_vm5, %v1769_v47, 0.0 }
 0x86c   :  { %732 = vadd.xlane.f32.xlu0 %v731_v45 }
 0x882   :  { %1717 = vrot.lane.b32.xlu0 %v1977_v48, %s1872_s15 }
 0x8f5   :  { %v736_v53 = vpop.xlane.xlu0 %735 }
 0x8f6   :  { %1770 = vrcp.f32 %v736_v53 }
 0x8f9   :  { %v733_v54 = vpop.xlane.xlu0 %732 }
 0x8fa   :  { %1772 = vrcp.f32 %v733_v54 }
 0x8fd   :  { %v1718_v55 = vpop.permute.xlu0 %1717 }
 0x8fe   :  { %v1720_v56 = vunpack.i.h.bf16 %v1718_v55  ;;  %v1719_v57 = vunpack.i.l.bf16 %v1718_v55 }
 0x900   :  { %v1633_v58 = vpack.c.bf16 %v1720_v56, %v1719_v57  ;;  %v1771_v61 = vpop.eup %1770 }
 0x901   :  { %v740_v2 = vmul.f32 %v1771_v61, %v1767_v50 }
 0x902   :  { %1635 = vmatprep.subr.msk.bf16.mxu1 %vm1983_vm2, %v1633_v58 }
 0x904   :  { %v1773_v62 = vpop.eup %1772 }
 0x905   :  { %v738_v63 = vmul.f32 %v1773_v62, %v1769_v47 }
 0x907   :  { %1545 = vmatprep.mubr.msk.f32.mxu1 %vm314_vm5, %v738_v63 }
 0x908   :  { %1546 = vmatmul.mubr.msk.f32.vlgmr.msra.gmra.mrb[6].mxu1 %vm314_vm5, %v740_v2 }
 0x909   :  { %1638 = vmatpush3.bf16.xpose.msk.msra.mxu1 %vm1983_vm2, %v1633_v58  ;;  %1552 = vmatprep.mubr.msk.f32.mxu1 %vm228_vm1, %v829_v3 }
 0x910   :  { %1553 = vmatmul.mubr.msk.f32.vlgmr.msra.gmra.mrb[8].mxu1 %vm228_vm1, %v831_v4 }
 0x9db   :  { %v1547_v7 = vpop.f32.mrb[6].mxu1 }
 0x9dc   :  { %v819_v9 = vpop.f32.mrb[7].mxu1 }
 0x9e3   :  { %v1554_v10 = vpop.f32.mrb[8].mxu1 }
 0x9e4   :  { %v920_v11 = vsel %vm1996_vm3, %v1554_v10, -1e+30  ;;  %v910_v12 = vpop.f32.mrb[9].mxu1 }
 0x9e5   :  { %v919_v13 = vsel %vm2000_vm4, %v910_v12, -1e+30  ;;  %v924_v14 = vsel %vm314_vm5, %v920_v11, -inf }
 0x9e6   :  { %925 = vmax.xlane.f32.xlu0 %v924_v14  ;;  %v921_v52 = vsel %vm314_vm5, %v919_v13, -inf }
 0x9e7   :  { %922 = vmax.xlane.f32.xlu1 %v921_v52 }
 0x9f8   :  { %1722 = vrot.lane.b32.xlu1 %v1977_v48, %s1873_s16 }
 0x9fc   :  { %1732 = vrot.lane.b32.xlu1 %v1731_v15, %s1863_s6 }
 0xa00   :  { %1032 = vrot.lane.b32.xlu1 %v2051_v27, %s1860_s20 }
 0xa04   :  { %1034 = vrot.lane.b32.xlu1 %v2049_v26, %s1860_s20 }
 0xa08   :  { %1042 = vrot.lane.b32.xlu1 %v1547_v7, %s1874_s17 }
 0xa73   :  { %v926_v59 = vpop.xlane.xlu0 %925 }
 0xa74   :  { %v928_v60 = vsub.f32 %v920_v11, %v926_v59  ;;  %v923_v16 = vpop.xlane.xlu1 %922 }
 0xa75   :  { %v927_v17 = vsub.f32 %v919_v13, %v923_v16 }
 0xa76   :  { %v931_v18 = vmul.f32 1.442695, %v928_v60 }
 0xa77   :  { %v929_v21 = vmul.f32 1.442695, %v927_v17  ;;  %v48_v17 = vld [vmem:[#allocation5 + $0x30] sm:$0xff] }
 0xa78   :  { %v1723_v48 = vpop.permute.xlu1 %1722 }
 0xa79   :  { %1774 = vpow2.f32 %v929_v21  ;;  %v1725_v24 = vunpack.i.h.bf16 %v1723_v48  ;;  %v1724_v22 = vunpack.i.l.bf16 %v1723_v48 }
 0xa7a   :  { %1776 = vpow2.f32 %v931_v18  ;;  %v49_v18 = vld [vmem:[#allocation5 + $0x38] sm:$0xff] }
 0xa7b   :  { %v1639_v23 = vpack.c.bf16 %v1725_v24, %v1724_v22  ;;  %v1655_v21 = vpack.c.bf16 %v49_v18, %v48_v17  ;;  %v1741_v24 = vpack.i.bf16 %v49_v18, %v48_v17 }
 0xa7c   :  { %v1733_v36 = vpop.permute.xlu1 %1732 }
 0xa7d   :  { %1640 = vmatprep.subr.bf16.mxu0 %v1639_v23  ;;  %v1735_v38 = vunpack.i.h.bf16 %v1733_v36  ;;  %v1734_v41 = vunpack.i.l.bf16 %v1733_v36 }
 0xa7e   :  { %1642 = vmatpush3.bf16.msra.mxu0 %v1639_v23 }
 0xa7f   :  { %v1647_v19 = vpack.c.bf16 %v1735_v38, %v1734_v41 }
 0xa80   :  { %v1033_v49 = vpop.permute.xlu1 %1032 }
 0xa81   :  { %v1054_v45 = vsel %vm228_vm1, %v2027_v40, %v1033_v49 }
 0xa83   :  { %v1775_v27 = vpop.eup %1774 }
 0xa84   :  { %v933_v28 = vsel %vm314_vm5, %v1775_v27, 0.0  ;;  %v1777_v26 = vpop.eup %1776  ;;  %v1035_v50 = vpop.permute.xlu1 %1034 }
 0xa85   :  { %934 = vadd.xlane.f32.xlu0 %v933_v28  ;;  %v936_v29 = vsel %vm314_vm5, %v1777_v26, 0.0  ;;  %v1055_v54 = vsel %vm228_vm1, %v2025_v39, %v1035_v50 }
 0xa88   :  { %v1043_v51 = vpop.permute.xlu1 %1042 }
 0xa89   :  { %937 = vadd.xlane.f32.xlu0 %v936_v29  ;;  %v1057_v57 = vsel %vm314_vm5, %v1055_v54, %v1043_v51 }
 0xa9f   :  { %1727 = vrot.lane.b32.xlu0 %v1726_v25, %s1863_s6 }
 0xaa3   :  { %1040 = vrot.lane.b32.xlu0 %v819_v9, %s1874_s17  ;;  %v1192_v9 = vsub.s32 2, %v1931_v5  ;;  %v46_v5 = vld [vmem:[#allocation5 + $0x20] sm:$0xff] }
 0xaa5   :  { %v1193_v10 = vrot.slane %v1933_v6, %v1192_v9  ;;  %v47_v6 = vld [vmem:[#allocation5 + $0x28] sm:$0xff] }
 0xaa6   :  { %v1651_v16 = vpack.c.bf16 %v47_v6, %v46_v5  ;;  %v1736_v48 = vpack.i.bf16 %v47_v6, %v46_v5 }
 0xaa8   :  { %1652 = vmatprep.subr.bf16.mxu1 %v1651_v16 }
 0xaa9   :  { %1654 = vmatpush3.bf16.msra.mxu1 %v1651_v16 }
 0xaaa   :  { %1656 = vmatprep.subr.bf16.mxu1 %v1655_v21 }
 0xaad   :  { %1658 = vmatpush3.bf16.msra.mxu1 %v1655_v21 }
 0xb12   :  { %v935_v30 = vpop.xlane.xlu0 %934 }
 0xb13   :  { %1778 = vrcp.f32 %v935_v30 }
 0xb16   :  { %v938_v31 = vpop.xlane.xlu0 %937 }
 0xb17   :  { %1780 = vrcp.f32 %v938_v31 }
 0xb1a   :  { %v1728_v32 = vpop.permute.xlu0 %1727 }
 0xb1b   :  { %v1730_v33 = vunpack.i.h.bf16 %v1728_v32  ;;  %v1729_v34 = vunpack.i.l.bf16 %v1728_v32 }
 0xb1d   :  { %v1779_v35 = vpop.eup %1778  ;;  %v1643_v37 = vpack.c.bf16 %v1730_v33, %v1729_v34 }
 0xb1e   :  { %v940_v42 = vmul.f32 %v1779_v35, %v1775_v27  ;;  %v1041_v47 = vpop.permute.xlu0 %1040 }
 0xb1f   :  { %1644 = vmatprep.subr.bf16.mxu0 %v1643_v37  ;;  %v1056_v55 = vsel %vm314_vm5, %v1054_v45, %v1041_v47 }
 0xb20   :  { %1559 = vmatprep.mubr.msk.f32.mxu0 %vm314_vm5, %v940_v42 }
 0xb21   :  { %v1781_v44 = vpop.eup %1780 }
 0xb22   :  { %v942_v20 = vmul.f32 %v1781_v44, %v1777_v26 }
 0xb24   :  { %1560 = vmatmul.mubr.msk.f32.vlgmr.msra.gmra.mrb[6].mxu0 %vm314_vm5, %v942_v20 }
 0xb25   :  { %1646 = vmatpush3.bf16.msra.mxu0 %v1643_v37 }
 0xb26   :  { %1648 = vmatprep.subr.bf16.mxu0 %v1647_v19 }
 0xb29   :  { %1650 = vmatpush3.bf16.msra.mxu0 %v1647_v19 }
 0xbf7   :  { %v1561_v25 = vpop.f32.mrb[6].mxu0 }
 0xbf8   :  { %1050 = vrot.lane.b32.xlu1 %v1561_v25, %s1875_s18  ;;  %v1021_v46 = vpop.f32.mrb[7].mxu0 }
 0xbf9   :  { %1048 = vrot.lane.b32.xlu0 %v1021_v46, %s1875_s18 }
 0xbfd   :  { %1078 = vrot.lane.b32.xlu0 %v1965_v43, %s1863_s6 }
 0xc6a   :  { %v1051_v53 = vpop.permute.xlu1 %1050 }
 0xc6b   :  { %v1049_v56 = vpop.permute.xlu0 %1048  ;;  %v1060_v61 = vsel %vm1058_vm6, %v1057_v57, %v1051_v53 }
 0xc6c   :  { %v1059_v58 = vsel %vm1058_vm6, %v1056_v55, %v1049_v56 }
 0xc6d   :  { %1570 = vmatprep.mubr.msk.f32.mxu0 %vm51_vm0, %v1059_v58 }
 0xc6e   :  { %1571 = vmatmul.mubr.msk.f32.vlgmr.msra.gmra.mrb[8].mxu0 %vm51_vm0, %v1060_v61 }
 0xc6f   :  { %v1079_v43 = vpop.permute.xlu0 %1078 }
 0xd41   :  { %v1572_v62 = vpop.f32.mrb[8].mxu0 }
 0xd42   :  { %v1159_v63 = vadd.f32 %v1572_v62, %v1079_v43  ;;  %v1153_v2 = vpop.f32.mrb[9].mxu0 }
 0xd43   :  { %v1154_v40 = vadd.f32 %v1153_v2, %v1079_v43 }
 0xd44   :  { %v2106_v3 = vadd.f32 %v1159_v63, %v1924_v1 }
 0xd45   :  { %v2109_v39 = vadd.f32 %v1154_v40, %v1922_v0 }
 0xd46   :  { %v1167_v4 = vsel %vm51_vm0, %v2106_v3, 0.0 }
 0xd47   :  { %1168 = vadd.xlane.f32.xlu0 %v1167_v4  ;;  %v1164_v7 = vsel %vm51_vm0, %v2109_v39, 0.0 }
 0xd48   :  { %1165 = vadd.xlane.f32.xlu1 %v1164_v7 }
 0xd59   :  { %1197 = vrot.lane.b32.xlu1 %v1193_v10, %s1864_s7 }
 0xd5d   :  { %1742 = vrot.lane.b32.xlu1 %v1741_v24, %s1864_s7 }
 0xd61   :  { %1301 = vrot.lane.b32.xlu1 %v1937_v8, %s1864_s7 }
 0xdd4   :  { %v1169_v11 = vpop.xlane.xlu0 %1168 }
 0xdd5   :  { %v1171_v1 = vmul.f32 0.03125, %v1169_v11  ;;  %v1166_v12 = vpop.xlane.xlu1 %1165 }
 0xdd6   :  { %v1170_v13 = vmul.f32 0.03125, %v1166_v12 }
 0xdd7   :  { %v1173_v0 = vsub.f32 %v2106_v3, %v1171_v1 }
 0xdd8   :  { %v1172_v14 = vsub.f32 %v2109_v39, %v1170_v13 }
 0xdd9   :  { %v1175_v59 = vmul.f32 %v1173_v0, %v1173_v0  ;;  %v1198_v30 = vpop.permute.xlu1 %1197 }
 0xdda   :  { %v1174_v52 = vmul.f32 %v1172_v14, %v1172_v14 }
 0xddb   :  { %v1179_v60 = vsel %vm51_vm0, %v1175_v59, 0.0 }
 0xddc   :  { %v1176_v15 = vsel %vm51_vm0, %v1174_v52, 0.0 }
 0xddd   :  { %1177 = vadd.xlane.f32.xlu0 %v1176_v15  ;;  %v1743_v32 = vpop.permute.xlu1 %1742 }
 0xdde   :  { %v1745_v36 = vunpack.i.h.bf16 %v1743_v32  ;;  %v1744_v37 = vunpack.i.l.bf16 %v1743_v32 }
 0xde0   :  { %v1663_v42 = vpack.c.bf16 %v1745_v36, %v1744_v37 }
 0xde1   :  { %1180 = vadd.xlane.f32.xlu0 %v1179_v60  ;;  %v1302_v55 = vpop.permute.xlu1 %1301 }
 0xdf7   :  { %1737 = vrot.lane.b32.xlu0 %v1736_v48, %s1864_s7 }
 0xe6a   :  { %v1178_v22 = vpop.xlane.xlu0 %1177 }
 0xe6b   :  { %v1182_v23 = vmul.f32 0.03125, %v1178_v22 }
 0xe6d   :  { %v1184_v27 = vadd.f32 1e-05, %v1182_v23 }
 0xe6e   :  { %v1181_v28 = vpop.xlane.xlu0 %1180 }
 0xe6f   :  { %1782 = vrsqrt.f32 %v1184_v27  ;;  %v1183_v26 = vmul.f32 0.03125, %v1181_v28 }
 0xe71   :  { %v1185_v29 = vadd.f32 1e-05, %v1183_v26 }
 0xe72   :  { %v1738_v31 = vpop.permute.xlu0 %1737 }
 0xe73   :  { %1784 = vrsqrt.f32 %v1185_v29  ;;  %v1740_v34 = vunpack.i.h.bf16 %v1738_v31  ;;  %v1739_v35 = vunpack.i.l.bf16 %v1738_v31 }
 0xe75   :  { %v1659_v41 = vpack.c.bf16 %v1740_v34, %v1739_v35 }
 0xe77   :  { %1660 = vmatprep.subr.bf16.mxu0 %v1659_v41 }
 0xe78   :  { %1662 = vmatpush3.bf16.msra.mxu0 %v1659_v41 }
 0xe79   :  { %v1783_v33 = vpop.eup %1782  ;;  %1664 = vmatprep.subr.bf16.mxu0 %v1663_v42 }
 0xe7a   :  { %v1188_v38 = vmul.f32 %v1783_v33, %v1172_v14 }
 0xe7c   :  { %v1194_v44 = vmul.f32 %v1193_v10, %v1188_v38  ;;  %1666 = vmatpush3.bf16.msra.mxu0 %v1663_v42 }
 0xe7d   :  { %v1785_v19 = vpop.eup %1784 }
 0xe7e   :  { %v1189_v20 = vmul.f32 %v1785_v19, %v1173_v0  ;;  %v1200_v25 = vadd.f32 %v1198_v30, %v1194_v44 }
 0xe80   :  { %v1195_v46 = vmul.f32 %v1193_v10, %v1189_v20  ;;  %1581 = vmatprep.mubr.msk.f32.mxu1 %vm51_vm0, %v1200_v25 }
 0xe82   :  { %v1201_v49 = vadd.f32 %v1198_v30, %v1195_v46 }
 0xe84   :  { %1582 = vmatmul.mubr.msk.f32.vlgmr.msra.gmra.mrb[10].mxu1 %vm51_vm0, %v1201_v49 }
 0xf57   :  { %v1583_v50 = vpop.f32.mrb[10].mxu1 }
 0xf58   :  { %v1280_v51 = vadd.f32 %v1583_v50, %v1937_v8  ;;  %v1274_v47 = vpop.f32.mrb[11].mxu1 }
 0xf59   :  { %v1275_v45 = vadd.f32 %v1274_v47, %v1937_v8 }
 0xf5a   :  { %v1284_v54 = vmax.f32 %v1280_v51, 0.0 }
 0xf5b   :  { %v1283_v53 = vmax.f32 %v1275_v45, 0.0 }
 0xf5d   :  { %1592 = vmatprep.mubr.msk.f32.mxu0 %vm51_vm0, %v1283_v53 }
 0xf5e   :  { %1593 = vmatmul.mubr.msk.f32.vlgmr.msra.gmra.mrb[10].mxu0 %vm51_vm0, %v1284_v54 }
0x1031   :  { %v1594_v56 = vpop.f32.mrb[10].mxu0 }
0x1032   :  { %v1382_v57 = vadd.f32 %v1594_v56, %v1302_v55  ;;  %v1376_v58 = vpop.f32.mrb[11].mxu0 }
0x1033   :  { %v1377_v61 = vadd.f32 %v1376_v58, %v1302_v55 }
0x1034   :  { %v1386_v43 = vadd.f32 %v1382_v57, %v2106_v3 }
0x1035   :  { %v1385_v62 = vadd.f32 %v1377_v61, %v2109_v39 }
0x1036   :  { %1388 = vst.msk [vmem:[#allocation7 + $0x8] sm:$0xff] %vm51_vm0, %v1386_v43 }
0x1037   :  { %1387 = vst.msk [vmem:[#allocation7] sm:$0xff] %vm51_vm0, %v1385_v62 }
0x1038   :  { %1841 = shalt.err (!%p1838_p6)
}
0x1039   :  { %s1842_s26 = scalar_lea.hbm %s2153_s2, 256 }
0x103a   :  { %p1843_p7 = scmp.ne.s32.totalorder %s2153_s2, %s1842_s26  ;;  %p1846_p8 = scmp.lt.u32.totalorder %s1842_s26, %s2153_s2 }
0x103c   :  { %p1848_p9 = pnand %p1846_p8, %p1843_p7 }
0x103e   :  { %1851 = shalt.err (!%p1848_p9)
}
0x103f   :  { %1400 = dma.vmem_to_hbm [thread:$0]  %s1395_s22, 256, %s2153_s2, [#allocation4], %s1859_s19, %s1859_s19, %s1860_s20  }
0x1040   :  { %1856 = dma.done.wait [#allocation4], 256  }
0x1041   :  { %1857 = vsyncadd [#allocation4], 4294967040 }
0x1042   :  { %1404 = vsyncpa [#allocation3], 1 }
0x1043   :  { %1405 = vsyncpa [#allocation6], 1 }
0x1044   :  { %1406 = vsyncpa [#allocation4], 1 }

</bundles_post_ra>
